<compile_context>
chip_gen: v7x
topology: tpu7x:2x2x1
jax: 0.10.0
libtpu: 0.0.40
codegen_flags: <defaults>
</compile_context>

<pallas_src>
import jax
import jax.numpy as jnp
from jax import lax
from jax.experimental import pallas as pl
from jax.experimental.pallas import tpu as pltpu


def mlp_kernel(x_ref, w1_ref, b1_ref, w2_ref, b2_ref, w3_ref, b3_ref, o_ref):
    x = x_ref[...]                                   # (TB, n_in)  streamed
    w1 = w1_ref[...].astype(x.dtype)                 # (15, n_in)  resident (bf16 cast is a tiny no-op for f32)

    # Layer 1: W1 @ x^T  (contract n_in of both operands) -> (15, TB).
    # Batch ends up on the lane axis; MXU matmul with f32 accumulation.
    h1 = lax.dot_general(
        w1, x, (((1,), (1,)), ((), ())), preferred_element_type=jnp.float32
    )
    h1 = jnp.maximum(h1 + b1_ref[...], 0.0)          # (15, TB)

    # Layer 2: (8, 15) @ (15, TB) -> (8, TB) on the MXU.
    h2 = jnp.dot(w2_ref[...], h1, preferred_element_type=jnp.float32)
    h2 = jnp.maximum(h2 + b2_ref[...], 0.0)          # (8, TB)

    # Layer 3: K=8, N=1 contraction -> VPU multiply + cross-sublane reduce;
    # keeps this off the MXU where it would be pure fill latency.
    h3 = jnp.sum(h2 * w3_ref[...], axis=0, keepdims=True)   # (1, TB)
    h3 = jnp.maximum(h3 + b3_ref[...], 0.0)

    o_ref[...] = h3.astype(o_ref.dtype)              # dense lane-major store


def prepare_params(torch_params):
    """One-time conversion of PyTorch-layout params to kernel layout.

    Weights stay in PyTorch (out, in) layout (no transposes needed with the
    W @ x^T formulation); biases become column vectors that broadcast over
    the lane (batch) axis; w3 is stored as an (8, 1) column for the VPU path.
    """
    return {
        "w1": torch_params["w1"],                     # (15, n_in)
        "b1": torch_params["b1"].reshape(-1, 1),      # (15, 1)
        "w2": torch_params["w2"],                     # (8, 15)
        "b2": torch_params["b2"].reshape(-1, 1),      # (8, 1)
        "w3": torch_params["w3"].reshape(-1, 1),      # (8, 1)
        "b3": torch_params["b3"].reshape(-1, 1),      # (1, 1)
    }


def _choose_tile(B, block_b, min_grid=4):
    """Pick the batch tile.

    * Small batches (< 256): one full block (always layout-legal).
    * Otherwise: the largest 128-multiple tile <= block_b that still yields
      roughly `min_grid` grid steps, so v7x can shard steps across both
      TensorCores and the pipeline has work to overlap.  Never below 128.
    """
    if B < 2 * 128:
        return B
    tb = min(block_b, max(128, (B // min_grid) // 128 * 128))
    return tb


def net_forward(x, kparams, *, block_b=8192, x_dtype=None, buffer_count=3):
    """x: (B, n_entradas).  kparams: output of prepare_params().

    block_b:      cap on the batch tile (rows).  8192 keeps triple-buffered x
                  + output ~13 MiB of VMEM after lane padding.
    x_dtype:      optionally jnp.bfloat16 to halve the x HBM stream
                  (~1e-2-class tolerance); default None keeps f32.
    buffer_count: pipeline depth for the x stream (None / 2 = default double
                  buffering).
    """
    B, n_in = x.shape
    n_h1 = kparams["w1"].shape[0]   # 15
    n_h2 = kparams["w2"].shape[0]   # 8

    if x_dtype is not None and x.dtype != x_dtype:
        x = x.astype(x_dtype)       # only B-scaling HBM stream; cast once here

    tb = _choose_tile(B, block_b)
    grid = (pl.cdiv(B, tb),)
    if tb != B:
        # Tiled case: lane dim of the output block / sublane dim of the x
        # block must be multiples of (128, 8).  Ragged last blocks are fine:
        # padded x rows produce values only in output lanes that are dropped
        # on writeback.
        assert tb % 128 == 0

    weight_bytes = 4 * (n_h1 * n_in + n_h1 + n_h2 * n_h1 + n_h2 + n_h2 + 1)
    cost = pl.CostEstimate(
        flops=2 * B * (n_in * n_h1 + n_h1 * n_h2 + n_h2),
        transcendentals=0,
        bytes_accessed=B * n_in * x.dtype.itemsize + B * 4 + weight_bytes,
    )

    def build(buffers):
        x_spec_kwargs = {}
        if buffers is not None and buffers != 2:
            x_spec_kwargs["pipeline_mode"] = pl.Buffered(buffers)
        return pl.pallas_call(
            mlp_kernel,
            out_shape=jax.ShapeDtypeStruct((1, B), jnp.float32),
            grid=grid,
            in_specs=[
                # x: the only operand that scales with B, streamed over the grid.
                pl.BlockSpec((tb, n_in), lambda i: (i, 0), **x_spec_kwargs),
                # Weights / biases: constant index_map -> DMA'd once, VMEM-resident.
                pl.BlockSpec((n_h1, n_in), lambda i: (0, 0)),   # w1
                pl.BlockSpec((n_h1, 1),    lambda i: (0, 0)),   # b1
                pl.BlockSpec((n_h2, n_h1), lambda i: (0, 0)),   # w2
                pl.BlockSpec((n_h2, 1),    lambda i: (0, 0)),   # b2
                pl.BlockSpec((n_h2, 1),    lambda i: (0, 0)),   # w3 (column)
                pl.BlockSpec((1, 1),       lambda i: (0, 0)),   # b3
            ],
            out_specs=pl.BlockSpec((1, tb), lambda i: (0, i)),
            compiler_params=pltpu.CompilerParams(
                # Independent batch tiles -> shardable across both TCs on v7x.
                dimension_semantics=("parallel",),
            ),
            cost_estimate=cost,
        )

    args = (
        x,
        kparams["w1"], kparams["b1"],
        kparams["w2"], kparams["b2"],
        kparams["w3"], kparams["b3"],
    )

    # Deeper buffering only pays off with a multi-step grid; fall back to the
    # default double-buffered pipeline if this JAX build rejects Buffered().
    want_buffers = buffer_count if grid[0] > 1 else None
    try:
        out_t = build(want_buffers)(*args)
    except Exception:
        out_t = build(None)(*args)

    # (1, B) -> (B, 1): same row-major flattening, guaranteed zero-copy bitcast.
    return out_t.reshape(B, 1)


def init_params(key, n_entradas):
    """Deterministic init matching nn.Linear parameter shapes (out, in)."""
    ks = jax.random.split(key, 6)

    def uni(k, shape, fan_in):
        bound = 1.0 / jnp.sqrt(jnp.float32(fan_in))
        return jax.random.uniform(k, shape, jnp.float32, -bound, bound)

    return {
        "w1": uni(ks[0], (15, n_entradas), n_entradas),
        "b1": uni(ks[1], (15,), n_entradas),
        "w2": uni(ks[2], (8, 15), 15),
        "b2": uni(ks[3], (8,), 15),
        "w3": uni(ks[4], (1, 8), 8),
        "b3": uni(ks[5], (1,), 8),
    }


def net_reference(x, params):
    """Pure-JAX reference of the PyTorch forward pass."""
    h = jax.nn.relu(x @ params["w1"].T + params["b1"])
    h = jax.nn.relu(h @ params["w2"].T + params["b2"])
    h = jax.nn.relu(h @ params["w3"].T + params["b3"])
    return h


if __name__ == "__main__":
    key = jax.random.PRNGKey(0)
    k_x, k_p = jax.random.split(key)

    n_entradas = 32
    torch_params = init_params(k_p, n_entradas)
    kparams = prepare_params(torch_params)

    # --- Test 1: even multi-tile batch (tb=128 chosen -> 2 grid steps). ---
    B = 256
    x = jax.random.normal(k_x, (B, n_entradas), dtype=jnp.float32)
    y = net_forward(x, kparams)
    jax.block_until_ready(y)
    y_ref = net_reference(x, torch_params)
    assert y.shape == (B, 1)
    assert jnp.allclose(y, y_ref, atol=1e-5, rtol=1e-5)

    # --- Test 2: ragged batch (B % tb != 0) exercising edge-block handling. ---
    B_r = 300
    x_r = jax.random.normal(jax.random.fold_in(k_x, 1), (B_r, n_entradas),
                            dtype=jnp.float32)
    y_r = net_forward(x_r, kparams)
    jax.block_until_ready(y_r)
    y_r_ref = net_reference(x_r, torch_params)
    assert y_r.shape == (B_r, 1)
    assert jnp.allclose(y_r, y_r_ref, atol=1e-5, rtol=1e-5)

    # --- Test 3: optional bf16 streaming of x (looser-tolerance fast path). ---
    y_bf16 = net_forward(x, kparams, x_dtype=jnp.bfloat16)
    jax.block_until_ready(y_bf16)
    params_b = dict(torch_params)
    params_b["w1"] = torch_params["w1"].astype(jnp.bfloat16).astype(jnp.float32)
    x_b = x.astype(jnp.bfloat16).astype(jnp.float32)
    y_bf16_ref = net_reference(x_b, params_b)
    assert jnp.allclose(y_bf16, y_bf16_ref, atol=1e-3, rtol=1e-3)

    print("KERNEL_OK")
</pallas_src>

<mosaic_0001>
module attributes {stable_mosaic.version = 11 : i64} {
  func.func @mlp_kernel(%arg0: i32, %arg1: memref<128x32xf32, #tpu.memory_space<vmem>>, %arg2: memref<15x32xf32, #tpu.memory_space<vmem>>, %arg3: memref<15x1xf32, #tpu.memory_space<vmem>>, %arg4: memref<8x15xf32, #tpu.memory_space<vmem>>, %arg5: memref<8x1xf32, #tpu.memory_space<vmem>>, %arg6: memref<8x1xf32, #tpu.memory_space<vmem>>, %arg7: memref<1x1xf32, #tpu.memory_space<vmem>>, %arg8: memref<1x128xf32, #tpu.memory_space<vmem>>) attributes {dimension_semantics = [#tpu.dimension_semantics<parallel>], iteration_bounds = array<i64: 2>, scalar_prefetch = 0 : i64, scratch_operands = 0 : i64, tpu.core_type = #tpu.core_type<tc>, window_params = [{transform_indices = @transform_0, window_bounds = array<i64: 128, 32>}, {pipeline_mode = #tpu.pipeline_mode<synchronous>, transform_indices = @transform_1, window_bounds = array<i64: 15, 32>}, {pipeline_mode = #tpu.pipeline_mode<synchronous>, transform_indices = @transform_2, window_bounds = array<i64: 15, 1>}, {pipeline_mode = #tpu.pipeline_mode<synchronous>, transform_indices = @transform_3, window_bounds = array<i64: 8, 15>}, {pipeline_mode = #tpu.pipeline_mode<synchronous>, transform_indices = @transform_4, window_bounds = array<i64: 8, 1>}, {pipeline_mode = #tpu.pipeline_mode<synchronous>, transform_indices = @transform_5, window_bounds = array<i64: 8, 1>}, {pipeline_mode = #tpu.pipeline_mode<synchronous>, transform_indices = @transform_6, window_bounds = array<i64: 1, 1>}, {transform_indices = @transform_7, window_bounds = array<i64: 1, 128>}]} {
    %c0 = arith.constant 0 : index
    %c0_0 = arith.constant 0 : index
    %0 = vector.load %arg1[%c0, %c0_0] : memref<128x32xf32, #tpu.memory_space<vmem>>, vector<128x32xf32>
    %c0_1 = arith.constant 0 : index
    %c0_2 = arith.constant 0 : index
    %1 = vector.load %arg2[%c0_1, %c0_2] : memref<15x32xf32, #tpu.memory_space<vmem>>, vector<15x32xf32>
    %cst = arith.constant dense<0.000000e+00> : vector<15x128xf32>
    %2 = tpu.matmul %1, %0, %cst {dimension_numbers = #tpu.dot_dimension_numbers<[1], [1], [0], [0], [0, 0, 1, 0], [], []>} : vector<15x32xf32>, vector<128x32xf32>, vector<15x128xf32> -> vector<15x128xf32>
    %c0_3 = arith.constant 0 : index
    %c0_4 = arith.constant 0 : index
    %3 = vector.load %arg3[%c0_3, %c0_4] : memref<15x1xf32, #tpu.memory_space<vmem>>, vector<15x1xf32>
    %4 = vector.broadcast %3 : vector<15x1xf32> to vector<15x128xf32>
    %5 = arith.addf %2, %4 : vector<15x128xf32>
    %cst_5 = arith.constant 0.000000e+00 : f32
    %6 = vector.broadcast %cst_5 : f32 to vector<15x128xf32>
    %7 = arith.maximumf %5, %6 : vector<15x128xf32>
    %c0_6 = arith.constant 0 : index
    %c0_7 = arith.constant 0 : index
    %8 = vector.load %arg4[%c0_6, %c0_7] : memref<8x15xf32, #tpu.memory_space<vmem>>, vector<8x15xf32>
    %cst_8 = arith.constant dense<0.000000e+00> : vector<8x128xf32>
    %9 = tpu.matmul %8, %7, %cst_8 {dimension_numbers = #tpu.dot_dimension_numbers<[1], [0], [0], [1], [0, 0, 1, 1], [], []>} : vector<8x15xf32>, vector<15x128xf32>, vector<8x128xf32> -> vector<8x128xf32>
    %c0_9 = arith.constant 0 : index
    %c0_10 = arith.constant 0 : index
    %10 = vector.load %arg5[%c0_9, %c0_10] : memref<8x1xf32, #tpu.memory_space<vmem>>, vector<8x1xf32>
    %11 = vector.broadcast %10 : vector<8x1xf32> to vector<8x128xf32>
    %12 = arith.addf %9, %11 : vector<8x128xf32>
    %cst_11 = arith.constant 0.000000e+00 : f32
    %13 = vector.broadcast %cst_11 : f32 to vector<8x128xf32>
    %14 = arith.maximumf %12, %13 : vector<8x128xf32>
    %c0_12 = arith.constant 0 : index
    %c0_13 = arith.constant 0 : index
    %15 = vector.load %arg6[%c0_12, %c0_13] : memref<8x1xf32, #tpu.memory_space<vmem>>, vector<8x1xf32>
    %16 = vector.broadcast %15 : vector<8x1xf32> to vector<8x128xf32>
    %17 = arith.mulf %14, %16 : vector<8x128xf32>
    %cst_14 = arith.constant dense<0.000000e+00> : vector<128xf32>
    %18 = vector.multi_reduction <add>, %17, %cst_14 [0] : vector<8x128xf32> to vector<128xf32>
    %19 = vector.shape_cast %18 : vector<128xf32> to vector<1x128xf32>
    %c0_15 = arith.constant 0 : index
    %c0_16 = arith.constant 0 : index
    %20 = vector.load %arg7[%c0_15, %c0_16] : memref<1x1xf32, #tpu.memory_space<vmem>>, vector<1x1xf32>
    %21 = vector.broadcast %20 : vector<1x1xf32> to vector<1x128xf32>
    %22 = arith.addf %19, %21 : vector<1x128xf32>
    %cst_17 = arith.constant 0.000000e+00 : f32
    %23 = vector.broadcast %cst_17 : f32 to vector<1x128xf32>
    %24 = arith.maximumf %22, %23 : vector<1x128xf32>
    %c0_18 = arith.constant 0 : index
    %c0_19 = arith.constant 0 : index
    %25 = vector.load %arg8[%c0_18, %c0_19] : memref<1x128xf32, #tpu.memory_space<vmem>>, vector<1x128xf32>
    tpu.vector_store %arg8[%c0_18, %c0_19], %24 {strides = array<i32>} : memref<1x128xf32, #tpu.memory_space<vmem>>, vector<1x128xf32>,
    return
  }
  func.func @transform_0(%arg0: i32) -> (i32, i32) {
    %c0_i32 = arith.constant 0 : i32
    %c0_i32_0 = arith.constant 0 : i32
    return %arg0, %c0_i32 : i32, i32
  }
  func.func @transform_1(%arg0: i32) -> (i32, i32) {
    %c0_i32 = arith.constant 0 : i32
    %c0_i32_0 = arith.constant 0 : i32
    %c0_i32_1 = arith.constant 0 : i32
    return %c0_i32, %c0_i32_0 : i32, i32
  }
  func.func @transform_2(%arg0: i32) -> (i32, i32) {
    %c0_i32 = arith.constant 0 : i32
    %c0_i32_0 = arith.constant 0 : i32
    %c0_i32_1 = arith.constant 0 : i32
    return %c0_i32, %c0_i32_0 : i32, i32
  }
  func.func @transform_3(%arg0: i32) -> (i32, i32) {
    %c0_i32 = arith.constant 0 : i32
    %c0_i32_0 = arith.constant 0 : i32
    %c0_i32_1 = arith.constant 0 : i32
    return %c0_i32, %c0_i32_0 : i32, i32
  }
  func.func @transform_4(%arg0: i32) -> (i32, i32) {
    %c0_i32 = arith.constant 0 : i32
    %c0_i32_0 = arith.constant 0 : i32
    %c0_i32_1 = arith.constant 0 : i32
    return %c0_i32, %c0_i32_0 : i32, i32
  }
  func.func @transform_5(%arg0: i32) -> (i32, i32) {
    %c0_i32 = arith.constant 0 : i32
    %c0_i32_0 = arith.constant 0 : i32
    %c0_i32_1 = arith.constant 0 : i32
    return %c0_i32, %c0_i32_0 : i32, i32
  }
  func.func @transform_6(%arg0: i32) -> (i32, i32) {
    %c0_i32 = arith.constant 0 : i32
    %c0_i32_0 = arith.constant 0 : i32
    %c0_i32_1 = arith.constant 0 : i32
    return %c0_i32, %c0_i32_0 : i32, i32
  }
  func.func @transform_7(%arg0: i32) -> (i32, i32) {
    %c0_i32 = arith.constant 0 : i32
    %c0_i32_0 = arith.constant 0 : i32
    return %c0_i32, %arg0 : i32, i32
  }
}

</mosaic_0001>

<bundles_post_ra>
// kernel: tpu_custom_call.1
= control target key start
LH: loop header
LB: loop body
LE: loop exit
PB: predicated region body
PF: predicated region fallthrough
CT: control target
= control target key end

     0   :  { %s1103_s0 = inlined_call_operand.vmem [shape: f32[256,32], index: 0, kind: input, shape index: {}]   ;;  %s1104_s1 = inlined_call_operand.vmem [shape: f32[15,32], index: 1, kind: input, shape index: {}]   ;;  %s1105_s2 = inlined_call_operand.vmem [shape: f32[15,1], index: 2, kind: input, shape index: {}]   ;;  %s1106_s3 = inlined_call_operand.vmem [shape: f32[8,15], index: 3, kind: input, shape index: {}]   ;;  %s1107_s4 = inlined_call_operand.vmem [shape: f32[8,1], index: 4, kind: input, shape index: {}]   ;;  %s1108_s5 = inlined_call_operand.vmem [shape: f32[8,1], index: 5, kind: input, shape index: {}]   ;;  %s1109_s6 = inlined_call_operand.<no memory space> [shape: f32[1,1], index: 6, kind: input, shape index: {}]   ;;  %s1110_s7 = inlined_call_operand.hbm [shape: f32[1,256], index: 7, kind: output, shape index: {}]  }
   0x1   :  { %v12_v0 = vstv %s1109_s6 }
   0x2   :  { %13 = vst [vmem:[#allocation2] sm:$0x1] %v12_v0 }
   0x3   :  { %14 = vsyncpa [#allocation4], 0 }
   0x4   :  { %16 = vsyncpa [#allocation4 + $0x1], 0  ;;  %s925_s26 = smov 0   ;;  %s927_s27 = smov 0  }
   0x5   :  { %s929_s28 = smov 0   ;;  %s931_s29 = smov 0  }
   0x6 LB: > { %s621_s6 = sadd.s32 4294967295, %s874_s29   ;;  %s622_s30 = sadd.s32 4294967294, %s874_s29   ;;  %s874_s29 = sphi %s931_s29, %s1118_s29   ;;  %s870_s28 = sphi %s929_s28, %s1117_s28   ;;  %s866_s27 = sphi %s927_s27, %s1116_s27   ;;  %s862_s26 = sphi %s925_s26, %s1115_s26  }
   0x7   : > { %s948_s8 = sadd.s32 1, %s874_s29   ;;  %s181_s9 = sadd.s32 1, %s870_s28 }
   0x8   : > { %s178_s10 = ssub.s32 %s874_s29, %s948_s8  ;;  %p191_p0 = scmp.ne.s32.totalorder %s870_s28, %s866_s27 }
   0x9   : > { %p179_p1 = scmp.eq.s32.totalorder %s178_s10, 0  ;;  %p192_p2 = scmp.eq.s32.totalorder %s621_s6, 1 }
   0xa   : > { %p197_p3 = scmp.ne.s32.totalorder %s866_s27, %s862_s26  ;;  %p198_p4 = scmp.eq.s32.totalorder %s622_s30, 1 }
   0xb   : > { %s958_s11 = scalar_select %p179_p1, %s870_s28, %s181_s9  }
   0xc   : > { %p960_p5 = por %p192_p2, %p191_p0  ;;  %p964_p6 = por %p198_p4, %p197_p3 }
   0xd   : > { %p625_p7 = scmp.ge.s32.totalorder %s874_s29, 1  ;;  %p243_p8 = scmp.lt.s32.totalorder %s874_s29, 3 }
   0xf   : > { %p244_p9 = pnand %p625_p7, %p243_p8 }
  0x10   : > { %s970_s14 = sshll.u32 (!%p244_p9), %s621_s6, 4  ;;  %vm310_vm0 = vcmask (!%p244_p9), 261120   ;;  %v296_v1 = vld [vmem:[%s1104_s1] sm:$0xff] (!%p244_p9)  ;;  %v876_v2 = vmov (!%p244_p9), 0   ;;  %v299_v4 = vld [vmem:[%s1105_s2 + $0x8] sm:$0x7f] (!%p244_p9)  ;;  %v547_v52 = vlaneseq (!%p244_p9) }
  0x11   : > { %247 = sbr.rel (%p244_p9) target bundleno = 565 (0x235), region = 48  ;;  %p275_p10 = scmp.lt.s32.totalorder (!%p244_p9), %s970_s14, 31  ;;  %704 = vmatprep.mubr.msk.f32.mxu0 (!%p244_p9), %vm310_vm0, %v296_v1  ;;  %810 = vset.pattern.permute.xlu0 (!%p244_p9), %v876_v2  ;;  %v298_v3 = vld [vmem:[%s1105_s2] sm:$0xff] (!%p244_p9)  ;;  %vm991_vm1 = vmpackc.low (!%p244_p9), %vm310_vm0, %vm310_vm0  ;;  %v297_v31 = vld [vmem:[%s1104_s1 + $0x8] sm:$0x7f] (!%p244_p9)  ;;  %v877_v32 = vmov (!%p244_p9), 0.0|0.0  }
  0x12   : > { %302 = vperm.xlu0 (!%p244_p9), %810, %v298_v3   ;;  %811 = vset.pattern.permute.xlu1 (!%p244_p9), %v876_v2  ;;  %v541_v6 = vld [vmem:[#allocation2] sm:$0x1] (!%p244_p9)  ;;  %vm878_vm2 = vmmov (!%p244_p9), 0   ;;  %v879_v33 = vmov (!%p244_p9), 0.0   ;;  %vm453_vm3 = vcmask (!%p244_p9), 1046528   ;;  %vm880_vm4 = vmmov (!%p244_p9), 1   ;;  %s1061_s24 = scalar_lea.hbm (!%p244_p9), %s1110_s7, %s970_s14 }
  0x13   : > { %762 = vmatprep.subr.bf16.mxu1 (!%p244_p9), %v877_v32  ;;  %711 = vmatprep.mubr.msk.f32.mxu1 (!%p244_p9), %vm878_vm2, %v879_v33  ;;  %v443_v34 = vld [vmem:[%s1107_s4] sm:$0xff] (!%p244_p9)  ;;  %vm764_vm5 = vmpackc.low (!%p244_p9), %vm453_vm3, %vm880_vm4  ;;  %vm449_vm6 = vcmask (!%p244_p9), 121856   ;;  %v548_v55 = vshrl.u32 (!%p244_p9), %v547_v52, 7  ;;  %s881_s30 = smov (!%p244_p9), [#allocation3]  }
  0x14   : > { %446 = vperm.xlu1 (!%p244_p9), %811, %v443_v34   ;;  %v528_v35 = vld [vmem:[%s1108_s5] sm:$0xff] (!%p244_p9)  ;;  %s816_s9 = sshll.u32 (!%p244_p9), %s881_s30, 4  ;;  %s817_s9 = int_to_ptr.vmem [resolvable:$false] %s816_s9 }
  0x15   : > { %v442_v45 = vld [vmem:[%s1106_s3] sm:$0xff] (!%p244_p9)  ;;  %v549_v58 = vsub.s32 (!%p244_p9), 0, %v548_v55  ;;  %s818_s10 = scalar_lea.vmem (!%p244_p9), %s817_s9, 32 }
  0x16   : > { %307 = vperm.xlu0 (!%p244_p9), %810, %v299_v4  }
  0x18   : > { %s276_s19 = scalar_select %p275_p10, %s970_s14, 31  ;;  %531 = vperm.xlu1 %811, %v528_v35  }
  0x1a   : > { %s627_s22 = sshll.u32 %s276_s19, 3  ;;  %544 = vperm.xlu0 %810, %v541_v6   ;;  %s272_s19 = sand.u32 1, %s866_s27  }
  0x1b   : > { %s987_s25 = scalar_lea.vmem %s1103_s0, %s627_s22  ;;  %s273_s20 = scalar_lea.vmem [#allocation3], %s272_s19 }
  0x1c   : > { %v280_v7 = vld [vmem:[%s987_s25] sm:$0xff]  ;;  %v281_v8 = vld [vmem:[%s987_s25 + $0x8] sm:$0xff]  ;;  %v282_v9 = vld [vmem:[%s987_s25 + $0x10] sm:$0xff]  ;;  %s567_s21 = sshll.u32 %s273_s20, 4  ;;  %s1063_s21 = int_to_ptr.vmem [resolvable:$true] %s567_s21 }
  0x1d   : > { %v714_v10 = vpack.c.bf16 %v281_v8, %v280_v7  ;;  %v283_v11 = vld [vmem:[%s987_s25 + $0x18] sm:$0xff]  ;;  %v284_v13 = vld [vmem:[%s987_s25 + $0x20] sm:$0xff]  ;;  %v285_v14 = vld [vmem:[%s987_s25 + $0x28] sm:$0xff]  ;;  %s812_s6 = scalar_lea.vmem %s1063_s21, 16  ;;  %p819_p0 = scmp.lt.s32.totalorder %s1063_s21, %s817_s9 }
  0x1e   : > { %v720_v12 = vpack.c.bf16 %v283_v11, %v282_v9  ;;  %v726_v15 = vpack.c.bf16 %v285_v14, %v284_v13  ;;  %v286_v16 = vld [vmem:[%s987_s25 + $0x30] sm:$0xff]  ;;  %v287_v17 = vld [vmem:[%s987_s25 + $0x38] sm:$0xff]  ;;  %v288_v19 = vld [vmem:[%s987_s25 + $0x40] sm:$0xff]  ;;  %p813_p11 = scmp.ne.s32.totalorder %s1063_s21, %s812_s6  ;;  %p820_p1 = scmp.lt.s32.totalorder %s818_s10, %s812_s6 }
  0x1f   : > { %716 = vmatprep.subr.msk.bf16.mxu0 %vm991_vm1, %v714_v10  ;;  %v732_v18 = vpack.c.bf16 %v287_v17, %v286_v16  ;;  %v289_v20 = vld [vmem:[%s987_s25 + $0x48] sm:$0xff]  ;;  %v290_v22 = vld [vmem:[%s987_s25 + $0x50] sm:$0xff]  ;;  %v291_v23 = vld [vmem:[%s987_s25 + $0x58] sm:$0xff] }
  0x20   : > { %719 = vmatpush3.bf16.xpose.msk.msra.mxu0 %vm991_vm1, %v714_v10  ;;  %v738_v21 = vpack.c.bf16 %v289_v20, %v288_v19  ;;  %v744_v24 = vpack.c.bf16 %v291_v23, %v290_v22  ;;  %v292_v25 = vld [vmem:[%s987_s25 + $0x60] sm:$0xff]  ;;  %v293_v26 = vld [vmem:[%s987_s25 + $0x68] sm:$0xff]  ;;  %v294_v28 = vld [vmem:[%s987_s25 + $0x70] sm:$0xff]  ;;  %p814_p12 = pnand %p813_p11, %p960_p5  ;;  %p821_p2 = por %p820_p1, %p819_p0 }
  0x21   : > { %722 = vmatprep.subr.msk.bf16.mxu0 %vm991_vm1, %v720_v12  ;;  %v750_v27 = vpack.c.bf16 %v293_v26, %v292_v25  ;;  %v295_v29 = vld [vmem:[%s987_s25 + $0x78] sm:$0xff]  ;;  %s555_s25 = scalar_lea.sflag [#allocation4], %s272_s19 }
  0x22   : > { %v756_v30 = vpack.c.bf16 %v295_v29, %v294_v28  ;;  %p815_p13 = pneg %p814_p12 }
  0x24   : > { %p822_p3 = pnand %p821_p2, %p815_p13 }
  0x28   : > { %725 = vmatpush3.bf16.xpose.msk.msra.mxu0 %vm991_vm1, %v720_v12 }
  0x29   : > { %728 = vmatprep.subr.msk.bf16.mxu0 %vm991_vm1, %v726_v15 }
  0x30   : > { %731 = vmatpush3.bf16.xpose.msk.msra.mxu0 %vm991_vm1, %v726_v15 }
  0x31   : > { %734 = vmatprep.subr.msk.bf16.mxu0 %vm991_vm1, %v732_v18 }
  0x38   : > { %737 = vmatpush3.bf16.xpose.msk.msra.mxu0 %vm991_vm1, %v732_v18 }
  0x39   : > { %740 = vmatprep.subr.msk.bf16.mxu0 %vm991_vm1, %v738_v21 }
  0x40   : > { %743 = vmatpush3.bf16.xpose.msk.msra.mxu0 %vm991_vm1, %v738_v21 }
  0x41   : > { %746 = vmatprep.subr.msk.bf16.mxu0 %vm991_vm1, %v744_v24 }
  0x48   : > { %749 = vmatpush3.bf16.xpose.msk.msra.mxu0 %vm991_vm1, %v744_v24 }
  0x49   : > { %752 = vmatprep.subr.msk.bf16.mxu0 %vm991_vm1, %v750_v27 }
  0x50   : > { %755 = vmatpush3.bf16.xpose.msk.msra.mxu0 %vm991_vm1, %v750_v27 }
  0x51   : > { %758 = vmatprep.subr.msk.bf16.mxu0 %vm991_vm1, %v756_v30 }
  0x58   : > { %761 = vmatpush3.bf16.xpose.msk.msra.mxu0 %vm991_vm1, %v756_v30 }
  0x5f   : > { %705 = vmatmul.mubr.msk.f32.vlgmr.msra.gmra.mrb[0].mxu0 %vm310_vm0, %v297_v31 }
  0x91   : > { %v303_v36 = vpop.permute.xlu0 %302 }
  0x93   : > { %v447_v46 = vpop.permute.xlu1 %446 }
  0x95   : > { %v308_v37 = vpop.permute.xlu0 %307 }
  0x97   : > { %v532_v51 = vpop.permute.xlu1 %531 }
  0x99   : > { %v545_v60 = vpop.permute.xlu0 %544 }
  0x9a   : > { %v550_v62 = vrot.slane %v545_v60, %v549_v58 }
 0x132   : > { %v706_v38 = vpop.f32.mrb[0].mxu0 }
 0x133   : > { %v437_v39 = vadd.f32 %v706_v38, %v308_v37  ;;  %v431_v40 = vpop.f32.mrb[1].mxu0 }
 0x134   : > { %v432_v41 = vadd.f32 %v431_v40, %v303_v36 }
 0x135   : > { %v441_v42 = vmax.f32 %v437_v39, 0.0 }
 0x136   : > { %v440_v43 = vmax.f32 %v432_v41, 0.0 }
 0x138   : > { %v763_v44 = vpack.c.bf16 %v441_v42, %v440_v43 }
 0x13a   : > { %765 = vmatpush3.bf16.msk.msra.mxu1 %vm764_vm5, %v763_v44 }
 0x13d   : > { %712 = vmatmul.mubr.msk.f32.vlgmr.msra.gmra.mrb[0].mxu1 %vm449_vm6, %v442_v45 }
 0x210   : > { %v523_v47 = vpop.f32.mrb[0].mxu1 }
 0x211   : > { %v524_v48 = vadd.f32 %v523_v47, %v447_v46  ;;  %v713_v49 = vpop.f32.mrb[1].mxu1 }
 0x213   : > { %v527_v50 = vmax.f32 %v524_v48, 0.0 }
 0x215   : > { %v534_v53 = vmul.f32 %v532_v51, %v527_v50 }
 0x217   : > { %v535_v54 = vrot.slane %v534_v53, 4 }
 0x219   : > { %v536_v56 = vadd.f32 %v535_v54, %v534_v53 }
 0x21b   : > { %v537_v57 = vrot.slane %v536_v56, 2 }
 0x21d   : > { %v538_v59 = vadd.f32 %v537_v57, %v536_v56 }
 0x21f   : > { %v539_v61 = vrot.slane %v538_v59, 1 }
 0x221   : > { %v540_v63 = vadd.f32 %v539_v61, %v538_v59 }
 0x223   : > { %v551_v0 = vadd.f32 %v550_v62, %v540_v63 }
 0x225   : > { %v552_v1 = vmax.f32 %v551_v0, 0.0 }
 0x227   : > { %553 = vst [vmem:[%s273_s20] sm:$0x1] %v552_v1 }
 0x228   : > { %825 = shalt.err (!%p822_p3)
}
 0x229   : > { %s826_s14 = scalar_lea.hbm %s1061_s24, 16  ;;  %s830_s17 = scalar_lea.hbm %s1110_s7, 32 }
 0x22a   : > { %p827_p4 = scmp.ne.s32.totalorder %s1061_s24, %s826_s14  ;;  %p831_p9 = scmp.lt.u32.totalorder %s1061_s24, %s1110_s7 }
 0x22b   : > { %p832_p10 = scmp.lt.u32.totalorder %s830_s17, %s826_s14  ;;  %p834_p12 = scmp.lt.u32.totalorder %s826_s14, %s1061_s24 }
 0x22c   : > { %p828_p7 = pnand %p827_p4, %p960_p5 }
 0x22d   : > { %p833_p11 = por %p832_p10, %p831_p9 }
 0x22e   : > { %p829_p8 = pneg %p828_p7 }
 0x22f   : > { %p835_p13 = por %p834_p12, %p833_p11 }
 0x231   : > { %p836_p0 = pnand %p835_p13, %p829_p8 }
 0x233   : > { %839 = shalt.err (!%p836_p0)
}
 0x234   : > { %766 = dma.vmem_to_hbm [thread:$0]  (%p960_p5), %s1063_s21, 16, %s1061_s24, %s555_s25  }
 0x235 PF: > { %p772_p1 = scmp.ge.s32.totalorder %s874_s29, 2  ;;  %s579_s20 = sand.u32 1, %s862_s26  }
 0x236   : > { %s580_s22 = scalar_lea.sflag [#allocation4], %s579_s20 }
 0x237   : > { %p769_p2 = pnand %p772_p1, %p964_p6 }
 0x239   : > { %857 = dma.done.wait (!%p769_p2), %s580_s22, 16  }
 0x23a   : > { %859 = vsyncadd (!%p769_p2), %s580_s22, 4294967280  ;;  %p19_p3 = scmp.ge.s32.totalorder %s948_s8, 4   ;;  %s1115_s26 = smov %s866_s27 }
 0x23b   : > { %s1116_s27 = smov %s870_s28  ;;  %s1117_s28 = smov %s958_s11 }
 0x23c   : > { %s1118_s29 = smov %s948_s8  ;;  %21 = sbr.rel (!%p19_p3) target bundleno = 6 (0x6), region = 83 }
 0x243   :  { %584 = vsyncpa [#allocation4], 1 }
 0x244   :  { %586 = vsyncpa [#allocation4 + $0x1], 1 }

</bundles_post_ra>
